<compile_context>
chip_gen: v7x
topology: tpu7x:2x2x1
jax: 0.10.0
libtpu: 0.0.40
codegen_flags: <defaults>
</compile_context>

<pallas_src>
import jax
import jax.numpy as jnp
from jax.experimental import pallas as pl
from jax.experimental.pallas import tpu as pltpu


def _lp_kernel(wl_ref, lin_ref, x_ref, start_ref, end_ref):
    # wl_ref : (1, L)   raw per-layer mixing logits (BertConcat weights)
    # lin_ref: (1, 4)   [W[0,0], W[1,0], b[0], b[1]] of torch.nn.Linear(1, 2)
    # x_ref  : (L, bn, F) activations, layer-major, lane-dense features
    # outputs: (bn, F)  start / end logits
    L = x_ref.shape[0]

    # BertConcat mixing weights: softmax over the L layer logits (tiny, VPU/EUP).
    wl = wl_ref[...]                                         # (1, L)
    m = jnp.max(wl, axis=-1, keepdims=True)
    e = jnp.exp(wl - m)
    p = e / jnp.sum(e, axis=-1, keepdims=True)               # (1, L)

    # Weighted sum over layers: unrolled (1,1)-broadcast MACs, fully on the VPU.
    pooled = p[0:1, 0:1] * x_ref[0]                          # (bn, F) f32
    for l in range(1, L):
        pooled = pooled + p[0:1, l:l + 1] * x_ref[l]

    # Linear(1, 2) on the kept singleton dim == two scalar affine maps.
    lin = lin_ref[...]                                       # (1, 4)
    start_ref[...] = pooled * lin[0:1, 0:1] + lin[0:1, 2:3]
    end_ref[...] = pooled * lin[0:1, 1:2] + lin[0:1, 3:4]


def lp_model_forward(x, layer_w, lin_w, lin_b, *, block_n=None):
    """LP_Model forward.

    x       : (B, T, F, L) float32 -- per-layer BERT activations stacked on the last axis
    layer_w : (L,)   BertConcat learned layer-mixing logits
    lin_w   : (2, 1) torch.nn.Linear(1, 2).weight
    lin_b   : (2,)   torch.nn.Linear(1, 2).bias
    returns : (start, end), each (B, T, F) float32
    """
    B, T, F, L = x.shape
    N = B * T
    if block_n is None:
        block_n = N                      # tiny / memory-bound: single grid step
    assert N % block_n == 0
    assert block_n == N or block_n % 8 == 0, "block_n must be a multiple of 8 (f32 sublane)"

    # Layout plumbing (wrapper-side, done once): layer axis -> leading slab axis,
    # features last (lane-dense).  (B, T, F, L) -> (L, N, F).
    xT = jnp.transpose(x, (3, 0, 1, 2)).reshape(L, N, F)

    wl = layer_w.reshape(1, L).astype(jnp.float32)
    # lin layout: [W[0,0], W[1,0], b[0], b[1]]
    lin = jnp.concatenate([lin_w.reshape(-1), lin_b.reshape(-1)]).reshape(1, 4).astype(jnp.float32)

    grid = (N // block_n,)
    wl_spec = pl.BlockSpec((1, L), lambda i: (0, 0))
    lin_spec = pl.BlockSpec((1, 4), lambda i: (0, 0))
    x_spec = pl.BlockSpec((L, block_n, F), lambda i: (0, i, 0))
    out_spec = pl.BlockSpec((block_n, F), lambda i: (i, 0))

    flops = N * F * (2 * L + 4)
    bytes_accessed = xT.size * 4 + 2 * N * F * 4 + (L + 4) * 4

    start, end = pl.pallas_call(
        _lp_kernel,
        out_shape=(jax.ShapeDtypeStruct((N, F), jnp.float32),
                   jax.ShapeDtypeStruct((N, F), jnp.float32)),
        grid_spec=pltpu.PrefetchScalarGridSpec(
            num_scalar_prefetch=0,
            grid=grid,
            in_specs=[wl_spec, lin_spec, x_spec],
            out_specs=(out_spec, out_spec),
        ),
        compiler_params=pltpu.CompilerParams(dimension_semantics=("parallel",)),
        cost_estimate=pl.CostEstimate(flops=flops, transcendentals=L,
                                      bytes_accessed=bytes_accessed),
    )(wl, lin, xT)

    return start.reshape(B, T, F), end.reshape(B, T, F)


def reference_forward(x, layer_w, lin_w, lin_b):
    # Pure-JAX mirror of the PyTorch forward (same BertConcat stand-in).
    p = jax.nn.softmax(layer_w, axis=0)                        # (L,)
    pooled = jnp.tensordot(x, p, axes=([3], [0]))[..., None]   # BertConcat -> (B,T,F,1)
    y = pooled @ lin_w.T + lin_b                               # Linear(1,2) -> (B,T,F,2)
    start = y[..., 0]                                          # split + squeeze
    end = y[..., 1]
    return start, end


if __name__ == "__main__":
    # Scaled-down shapes (original module: B=16, T=384, F=768, L=13).
    B, T, F, L = 2, 8, 128, 13
    key = jax.random.PRNGKey(0)
    kx, kw, kl, kb = jax.random.split(key, 4)
    x = jax.random.normal(kx, (B, T, F, L), dtype=jnp.float32)
    layer_w = 0.1 * jax.random.normal(kw, (L,), dtype=jnp.float32)
    lin_w = 0.5 * jax.random.normal(kl, (2, 1), dtype=jnp.float32)
    lin_b = 0.1 * jax.random.normal(kb, (2,), dtype=jnp.float32)

    start, end = lp_model_forward(x, layer_w, lin_w, lin_b)
    start, end = jax.block_until_ready((start, end))

    ref_start, ref_end = reference_forward(x, layer_w, lin_w, lin_b)
    ref_start, ref_end = jax.block_until_ready((ref_start, ref_end))

    assert start.shape == (B, T, F), start.shape
    assert end.shape == (B, T, F), end.shape
    err = max(float(jnp.max(jnp.abs(start - ref_start))),
              float(jnp.max(jnp.abs(end - ref_end))))
    if err > 1e-4:
        raise AssertionError(f"mismatch vs reference: max abs err = {err}")
    print("KERNEL_OK")
</pallas_src>

<mosaic_0001>
module attributes {stable_mosaic.version = 11 : i64} {
  func.func @_lp_kernel(%arg0: i32, %arg1: memref<1x13xf32, #tpu.memory_space<vmem>>, %arg2: memref<1x4xf32, #tpu.memory_space<vmem>>, %arg3: memref<13x16x128xf32, #tpu.memory_space<vmem>>, %arg4: memref<16x128xf32, #tpu.memory_space<vmem>>, %arg5: memref<16x128xf32, #tpu.memory_space<vmem>>) attributes {dimension_semantics = [#tpu.dimension_semantics<parallel>], iteration_bounds = array<i64: 1>, scalar_prefetch = 0 : i64, scratch_operands = 0 : i64, tpu.core_type = #tpu.core_type<tc>, window_params = [{pipeline_mode = #tpu.pipeline_mode<synchronous>, transform_indices = @transform_0, window_bounds = array<i64: 1, 13>}, {pipeline_mode = #tpu.pipeline_mode<synchronous>, transform_indices = @transform_1, window_bounds = array<i64: 1, 4>}, {transform_indices = @transform_2, window_bounds = array<i64: 13, 16, 128>}, {transform_indices = @transform_3, window_bounds = array<i64: 16, 128>}, {transform_indices = @transform_4, window_bounds = array<i64: 16, 128>}]} {
    %c0 = arith.constant 0 : index
    %c0_0 = arith.constant 0 : index
    %0 = vector.load %arg1[%c0, %c0_0] : memref<1x13xf32, #tpu.memory_space<vmem>>, vector<1x13xf32>
    %cst = arith.constant dense<0xFF800000> : vector<1xf32>
    %1 = vector.multi_reduction <maximumf>, %0, %cst [1] : vector<1x13xf32> to vector<1xf32>
    %2 = vector.shape_cast %1 : vector<1xf32> to vector<1x1xf32>
    %3 = vector.broadcast %2 : vector<1x1xf32> to vector<1x13xf32>
    %4 = arith.subf %0, %3 : vector<1x13xf32>
    %5 = math.exp %4 : vector<1x13xf32>
    %cst_1 = arith.constant dense<0.000000e+00> : vector<1xf32>
    %6 = vector.multi_reduction <add>, %5, %cst_1 [1] : vector<1x13xf32> to vector<1xf32>
    %7 = vector.shape_cast %6 : vector<1xf32> to vector<1x1xf32>
    %8 = vector.broadcast %7 : vector<1x1xf32> to vector<1x13xf32>
    %9 = arith.divf %5, %8 : vector<1x13xf32>
    %10 = vector.extract_strided_slice %9 {offsets = [0, 0], sizes = [1, 1], strides = [1, 1]} : vector<1x13xf32> to vector<1x1xf32>
    %c0_2 = arith.constant 0 : index
    %c0_3 = arith.constant 0 : index
    %c0_4 = arith.constant 0 : index
    %11 = vector.load %arg3[%c0_2, %c0_3, %c0_4] : memref<13x16x128xf32, #tpu.memory_space<vmem>>, vector<1x16x128xf32>
    %12 = vector.shape_cast %11 : vector<1x16x128xf32> to vector<16x128xf32>
    %13 = vector.broadcast %10 : vector<1x1xf32> to vector<16x128xf32>
    %14 = arith.mulf %13, %12 : vector<16x128xf32>
    %15 = vector.extract_strided_slice %9 {offsets = [0, 1], sizes = [1, 1], strides = [1, 1]} : vector<1x13xf32> to vector<1x1xf32>
    %c1 = arith.constant 1 : index
    %c0_5 = arith.constant 0 : index
    %c0_6 = arith.constant 0 : index
    %16 = vector.load %arg3[%c1, %c0_5, %c0_6] : memref<13x16x128xf32, #tpu.memory_space<vmem>>, vector<1x16x128xf32>
    %17 = vector.shape_cast %16 : vector<1x16x128xf32> to vector<16x128xf32>
    %18 = vector.broadcast %15 : vector<1x1xf32> to vector<16x128xf32>
    %19 = arith.mulf %18, %17 : vector<16x128xf32>
    %20 = arith.addf %14, %19 : vector<16x128xf32>
    %21 = vector.extract_strided_slice %9 {offsets = [0, 2], sizes = [1, 1], strides = [1, 1]} : vector<1x13xf32> to vector<1x1xf32>
    %c2 = arith.constant 2 : index
    %c0_7 = arith.constant 0 : index
    %c0_8 = arith.constant 0 : index
    %22 = vector.load %arg3[%c2, %c0_7, %c0_8] : memref<13x16x128xf32, #tpu.memory_space<vmem>>, vector<1x16x128xf32>
    %23 = vector.shape_cast %22 : vector<1x16x128xf32> to vector<16x128xf32>
    %24 = vector.broadcast %21 : vector<1x1xf32> to vector<16x128xf32>
    %25 = arith.mulf %24, %23 : vector<16x128xf32>
    %26 = arith.addf %20, %25 : vector<16x128xf32>
    %27 = vector.extract_strided_slice %9 {offsets = [0, 3], sizes = [1, 1], strides = [1, 1]} : vector<1x13xf32> to vector<1x1xf32>
    %c3 = arith.constant 3 : index
    %c0_9 = arith.constant 0 : index
    %c0_10 = arith.constant 0 : index
    %28 = vector.load %arg3[%c3, %c0_9, %c0_10] : memref<13x16x128xf32, #tpu.memory_space<vmem>>, vector<1x16x128xf32>
    %29 = vector.shape_cast %28 : vector<1x16x128xf32> to vector<16x128xf32>
    %30 = vector.broadcast %27 : vector<1x1xf32> to vector<16x128xf32>
    %31 = arith.mulf %30, %29 : vector<16x128xf32>
    %32 = arith.addf %26, %31 : vector<16x128xf32>
    %33 = vector.extract_strided_slice %9 {offsets = [0, 4], sizes = [1, 1], strides = [1, 1]} : vector<1x13xf32> to vector<1x1xf32>
    %c4 = arith.constant 4 : index
    %c0_11 = arith.constant 0 : index
    %c0_12 = arith.constant 0 : index
    %34 = vector.load %arg3[%c4, %c0_11, %c0_12] : memref<13x16x128xf32, #tpu.memory_space<vmem>>, vector<1x16x128xf32>
    %35 = vector.shape_cast %34 : vector<1x16x128xf32> to vector<16x128xf32>
    %36 = vector.broadcast %33 : vector<1x1xf32> to vector<16x128xf32>
    %37 = arith.mulf %36, %35 : vector<16x128xf32>
    %38 = arith.addf %32, %37 : vector<16x128xf32>
    %39 = vector.extract_strided_slice %9 {offsets = [0, 5], sizes = [1, 1], strides = [1, 1]} : vector<1x13xf32> to vector<1x1xf32>
    %c5 = arith.constant 5 : index
    %c0_13 = arith.constant 0 : index
    %c0_14 = arith.constant 0 : index
    %40 = vector.load %arg3[%c5, %c0_13, %c0_14] : memref<13x16x128xf32, #tpu.memory_space<vmem>>, vector<1x16x128xf32>
    %41 = vector.shape_cast %40 : vector<1x16x128xf32> to vector<16x128xf32>
    %42 = vector.broadcast %39 : vector<1x1xf32> to vector<16x128xf32>
    %43 = arith.mulf %42, %41 : vector<16x128xf32>
    %44 = arith.addf %38, %43 : vector<16x128xf32>
    %45 = vector.extract_strided_slice %9 {offsets = [0, 6], sizes = [1, 1], strides = [1, 1]} : vector<1x13xf32> to vector<1x1xf32>
    %c6 = arith.constant 6 : index
    %c0_15 = arith.constant 0 : index
    %c0_16 = arith.constant 0 : index
    %46 = vector.load %arg3[%c6, %c0_15, %c0_16] : memref<13x16x128xf32, #tpu.memory_space<vmem>>, vector<1x16x128xf32>
    %47 = vector.shape_cast %46 : vector<1x16x128xf32> to vector<16x128xf32>
    %48 = vector.broadcast %45 : vector<1x1xf32> to vector<16x128xf32>
    %49 = arith.mulf %48, %47 : vector<16x128xf32>
    %50 = arith.addf %44, %49 : vector<16x128xf32>
    %51 = vector.extract_strided_slice %9 {offsets = [0, 7], sizes = [1, 1], strides = [1, 1]} : vector<1x13xf32> to vector<1x1xf32>
    %c7 = arith.constant 7 : index
    %c0_17 = arith.constant 0 : index
    %c0_18 = arith.constant 0 : index
    %52 = vector.load %arg3[%c7, %c0_17, %c0_18] : memref<13x16x128xf32, #tpu.memory_space<vmem>>, vector<1x16x128xf32>
    %53 = vector.shape_cast %52 : vector<1x16x128xf32> to vector<16x128xf32>
    %54 = vector.broadcast %51 : vector<1x1xf32> to vector<16x128xf32>
    %55 = arith.mulf %54, %53 : vector<16x128xf32>
    %56 = arith.addf %50, %55 : vector<16x128xf32>
    %57 = vector.extract_strided_slice %9 {offsets = [0, 8], sizes = [1, 1], strides = [1, 1]} : vector<1x13xf32> to vector<1x1xf32>
    %c8 = arith.constant 8 : index
    %c0_19 = arith.constant 0 : index
    %c0_20 = arith.constant 0 : index
    %58 = vector.load %arg3[%c8, %c0_19, %c0_20] : memref<13x16x128xf32, #tpu.memory_space<vmem>>, vector<1x16x128xf32>
    %59 = vector.shape_cast %58 : vector<1x16x128xf32> to vector<16x128xf32>
    %60 = vector.broadcast %57 : vector<1x1xf32> to vector<16x128xf32>
    %61 = arith.mulf %60, %59 : vector<16x128xf32>
    %62 = arith.addf %56, %61 : vector<16x128xf32>
    %63 = vector.extract_strided_slice %9 {offsets = [0, 9], sizes = [1, 1], strides = [1, 1]} : vector<1x13xf32> to vector<1x1xf32>
    %c9 = arith.constant 9 : index
    %c0_21 = arith.constant 0 : index
    %c0_22 = arith.constant 0 : index
    %64 = vector.load %arg3[%c9, %c0_21, %c0_22] : memref<13x16x128xf32, #tpu.memory_space<vmem>>, vector<1x16x128xf32>
    %65 = vector.shape_cast %64 : vector<1x16x128xf32> to vector<16x128xf32>
    %66 = vector.broadcast %63 : vector<1x1xf32> to vector<16x128xf32>
    %67 = arith.mulf %66, %65 : vector<16x128xf32>
    %68 = arith.addf %62, %67 : vector<16x128xf32>
    %69 = vector.extract_strided_slice %9 {offsets = [0, 10], sizes = [1, 1], strides = [1, 1]} : vector<1x13xf32> to vector<1x1xf32>
    %c10 = arith.constant 10 : index
    %c0_23 = arith.constant 0 : index
    %c0_24 = arith.constant 0 : index
    %70 = vector.load %arg3[%c10, %c0_23, %c0_24] : memref<13x16x128xf32, #tpu.memory_space<vmem>>, vector<1x16x128xf32>
    %71 = vector.shape_cast %70 : vector<1x16x128xf32> to vector<16x128xf32>
    %72 = vector.broadcast %69 : vector<1x1xf32> to vector<16x128xf32>
    %73 = arith.mulf %72, %71 : vector<16x128xf32>
    %74 = arith.addf %68, %73 : vector<16x128xf32>
    %75 = vector.extract_strided_slice %9 {offsets = [0, 11], sizes = [1, 1], strides = [1, 1]} : vector<1x13xf32> to vector<1x1xf32>
    %c11 = arith.constant 11 : index
    %c0_25 = arith.constant 0 : index
    %c0_26 = arith.constant 0 : index
    %76 = vector.load %arg3[%c11, %c0_25, %c0_26] : memref<13x16x128xf32, #tpu.memory_space<vmem>>, vector<1x16x128xf32>
    %77 = vector.shape_cast %76 : vector<1x16x128xf32> to vector<16x128xf32>
    %78 = vector.broadcast %75 : vector<1x1xf32> to vector<16x128xf32>
    %79 = arith.mulf %78, %77 : vector<16x128xf32>
    %80 = arith.addf %74, %79 : vector<16x128xf32>
    %81 = vector.extract_strided_slice %9 {offsets = [0, 12], sizes = [1, 1], strides = [1, 1]} : vector<1x13xf32> to vector<1x1xf32>
    %c12 = arith.constant 12 : index
    %c0_27 = arith.constant 0 : index
    %c0_28 = arith.constant 0 : index
    %82 = vector.load %arg3[%c12, %c0_27, %c0_28] : memref<13x16x128xf32, #tpu.memory_space<vmem>>, vector<1x16x128xf32>
    %83 = vector.shape_cast %82 : vector<1x16x128xf32> to vector<16x128xf32>
    %84 = vector.broadcast %81 : vector<1x1xf32> to vector<16x128xf32>
    %85 = arith.mulf %84, %83 : vector<16x128xf32>
    %86 = arith.addf %80, %85 : vector<16x128xf32>
    %c0_29 = arith.constant 0 : index
    %c0_30 = arith.constant 0 : index
    %87 = vector.load %arg2[%c0_29, %c0_30] : memref<1x4xf32, #tpu.memory_space<vmem>>, vector<1x4xf32>
    %88 = vector.extract_strided_slice %87 {offsets = [0, 0], sizes = [1, 1], strides = [1, 1]} : vector<1x4xf32> to vector<1x1xf32>
    %89 = vector.broadcast %88 : vector<1x1xf32> to vector<16x128xf32>
    %90 = arith.mulf %86, %89 : vector<16x128xf32>
    %91 = vector.extract_strided_slice %87 {offsets = [0, 2], sizes = [1, 1], strides = [1, 1]} : vector<1x4xf32> to vector<1x1xf32>
    %92 = vector.broadcast %91 : vector<1x1xf32> to vector<16x128xf32>
    %93 = arith.addf %90, %92 : vector<16x128xf32>
    %c0_31 = arith.constant 0 : index
    %c0_32 = arith.constant 0 : index
    %94 = vector.load %arg4[%c0_31, %c0_32] : memref<16x128xf32, #tpu.memory_space<vmem>>, vector<16x128xf32>
    tpu.vector_store %arg4[%c0_31, %c0_32], %93 {strides = array<i32>} : memref<16x128xf32, #tpu.memory_space<vmem>>, vector<16x128xf32>,
    %95 = vector.extract_strided_slice %87 {offsets = [0, 1], sizes = [1, 1], strides = [1, 1]} : vector<1x4xf32> to vector<1x1xf32>
    %96 = vector.broadcast %95 : vector<1x1xf32> to vector<16x128xf32>
    %97 = arith.mulf %86, %96 : vector<16x128xf32>
    %98 = vector.extract_strided_slice %87 {offsets = [0, 3], sizes = [1, 1], strides = [1, 1]} : vector<1x4xf32> to vector<1x1xf32>
    %99 = vector.broadcast %98 : vector<1x1xf32> to vector<16x128xf32>
    %100 = arith.addf %97, %99 : vector<16x128xf32>
    %c0_33 = arith.constant 0 : index
    %c0_34 = arith.constant 0 : index
    %101 = vector.load %arg5[%c0_33, %c0_34] : memref<16x128xf32, #tpu.memory_space<vmem>>, vector<16x128xf32>
    tpu.vector_store %arg5[%c0_33, %c0_34], %100 {strides = array<i32>} : memref<16x128xf32, #tpu.memory_space<vmem>>, vector<16x128xf32>,
    return
  }
  func.func @transform_0(%arg0: i32) -> (i32, i32) {
    %c0_i32 = arith.constant 0 : i32
    %c0_i32_0 = arith.constant 0 : i32
    %c0_i32_1 = arith.constant 0 : i32
    return %c0_i32, %c0_i32_0 : i32, i32
  }
  func.func @transform_1(%arg0: i32) -> (i32, i32) {
    %c0_i32 = arith.constant 0 : i32
    %c0_i32_0 = arith.constant 0 : i32
    %c0_i32_1 = arith.constant 0 : i32
    return %c0_i32, %c0_i32_0 : i32, i32
  }
  func.func @transform_2(%arg0: i32) -> (i32, i32, i32) {
    %c0_i32 = arith.constant 0 : i32
    %c0_i32_0 = arith.constant 0 : i32
    %c0_i32_1 = arith.constant 0 : i32
    return %c0_i32, %arg0, %c0_i32_0 : i32, i32, i32
  }
  func.func @transform_3(%arg0: i32) -> (i32, i32) {
    %c0_i32 = arith.constant 0 : i32
    %c0_i32_0 = arith.constant 0 : i32
    return %arg0, %c0_i32 : i32, i32
  }
  func.func @transform_4(%arg0: i32) -> (i32, i32) {
    %c0_i32 = arith.constant 0 : i32
    %c0_i32_0 = arith.constant 0 : i32
    return %arg0, %c0_i32 : i32, i32
  }
}

</mosaic_0001>

<bundles_post_ra>
// kernel: tpu_custom_call.1
= control target key start
LH: loop header
LB: loop body
LE: loop exit
PB: predicated region body
PF: predicated region fallthrough
CT: control target
= control target key end

     0   :  { %10 = vsyncpa [#allocation3], 0  ;;  %s523_s0 = inlined_call_operand.hbm [shape: f32[1,13], index: 0, kind: input, shape index: {}]   ;;  %s524_s1 = inlined_call_operand.vmem [shape: f32[1,4], index: 1, kind: input, shape index: {}]   ;;  %s525_s2 = inlined_call_operand.hbm [shape: f32[13,16,128], index: 2, kind: input, shape index: {}]   ;;  %s526_s3 = inlined_call_operand.hbm [shape: f32[16,128], index: 3, kind: output, shape index: {0}]   ;;  %s527_s4 = inlined_call_operand.hbm [shape: f32[16,128], index: 4, kind: output, shape index: {1}]  }
   0x1   :  { %11 = vsyncpa [#allocation6], 0 }
   0x2   :  { %12 = vsyncpa [#allocation4], 0 }
   0x3   :  { %13 = vsyncpa [#allocation9], 0  ;;  %s408_s15 = smov [#allocation2]   ;;  %s409_s17 = smov [#allocation5]  }
   0x4   :  { %s20_s16 = sshll.u32 %s408_s15, 4  ;;  %s31_s18 = sshll.u32 %s409_s17, 4  ;;  %s21_s16 = int_to_ptr.vmem [resolvable:$true] %s20_s16  ;;  %s452_s18 = int_to_ptr.vmem [resolvable:$true] %s31_s18 }
   0x5   :  { %s312_s21 = scalar_lea.hbm %s523_s0, 16 }
   0x6   :  { %p313_p0 = scmp.ne.s32.totalorder %s523_s0, %s312_s21  ;;  %p316_p1 = scmp.lt.u32.totalorder %s312_s21, %s523_s0 }
   0x8   :  { %p318_p2 = pnand %p316_p1, %p313_p0 }
   0xa   :  { %321 = shalt.err (!%p318_p2)
}
   0xb   :  { %s322_s26 = scalar_lea.vmem %s21_s16, 16  ;;  %s326_s27 = scalar_lea.vmem %s21_s16, 32 }
   0xc   :  { %p323_p3 = scmp.ne.s32.totalorder %s21_s16, %s322_s26  ;;  %p327_p4 = scmp.lt.s32.totalorder %s21_s16, %s21_s16 }
   0xd   :  { %p328_p5 = scmp.lt.s32.totalorder %s326_s27, %s322_s26 }
   0xf   :  { %p329_p6 = por %p328_p5, %p327_p4 }
  0x11   :  { %p330_p7 = pnand %p329_p6, %p323_p3 }
  0x13   :  { %333 = shalt.err (!%p330_p7)
}
  0x14   :  { %23 = dma.hbm_to_vmem [thread:$0]  %s523_s0, 16, %s21_s16, [#allocation3]  }
  0x15   :  { %s334_s6 = scalar_lea.hbm %s525_s2, 3328 }
  0x16   :  { %p335_p8 = scmp.ne.s32.totalorder %s525_s2, %s334_s6  ;;  %p338_p9 = scmp.lt.u32.totalorder %s334_s6, %s525_s2 }
  0x18   :  { %p340_p10 = pnand %p338_p9, %p335_p8 }
  0x1a   :  { %343 = shalt.err (!%p340_p10)
}
  0x1b   :  { %s344_s11 = scalar_lea.vmem %s452_s18, 3328  ;;  %p349_p12 = scmp.lt.s32.totalorder %s452_s18, %s452_s18 }
  0x1c   :  { %p345_p11 = scmp.ne.s32.totalorder %s452_s18, %s344_s11  ;;  %p350_p13 = scmp.lt.s32.totalorder %s344_s11, %s344_s11 }
  0x1e   :  { %p351_p0 = por %p350_p13, %p349_p12 }
  0x20   :  { %p352_p1 = pnand %p351_p0, %p345_p11 }
  0x22   :  { %355 = shalt.err (!%p352_p1)
}
  0x23   :  { %s410_s0 = smov 128   ;;  %s411_s12 = smov 8  }
  0x24   :  { %37 = dma.hbm_to_vmem [thread:$0]  %s525_s2, 3328, %s452_s18, [#allocation6], %s410_s0, %s410_s0, %s411_s12  }
  0x25   :  { %400 = dma.done.wait [#allocation3], 16  }
  0x26   :  { %401 = vsyncadd [#allocation3], 4294967280 }
  0x27   :  { %402 = dma.done.wait [#allocation6], 3328  }
  0x28   :  { %403 = vsyncadd [#allocation6], 4294963968  ;;  %vm45_vm0 = vcmask 98304   ;;  %v44_v0 = vld [vmem:[#allocation2] sm:$0x1]  ;;  %v412_v7 = vmov 2   ;;  %v60_v10 = vlaneseq }
  0x29   :  { %v46_v1 = vsel %vm45_vm0, %v44_v0, -inf  ;;  %292 = vset.pattern.permute.xlu0 %v412_v7  ;;  %v413_v8 = vmov 0   ;;  %v414_v16 = vmov 1   ;;  %v270_v17 = vld [vmem:[%s524_s1] ss:$0 sm:$0xff]  ;;  %v415_v18 = vmov 3  }
  0x2a   :  { %47 = vmax.xlane.f32.xlu0 %v46_v1  ;;  %290 = vset.pattern.permute.xlu1 %v413_v8  ;;  %v61_v11 = vshrl.u32 %v60_v10, 7  ;;  %v416_v19 = vmov 4   ;;  %v417_v20 = vmov 5   ;;  %v418_v21 = vmov 6   ;;  %v71_v35 = vld [vmem:[#allocation5 + $0x10] sm:$0xff]  ;;  %v72_v36 = vld [vmem:[#allocation5 + $0x18] sm:$0xff] }
  0x2b   :  { %v419_v22 = vmov 7   ;;  %v420_v23 = vmov 8   ;;  %v421_v24 = vmov 9   ;;  %v422_v25 = vmov 10   ;;  %v57_v37 = vld [vmem:[#allocation5] sm:$0xff]  ;;  %v58_v38 = vld [vmem:[#allocation5 + $0x8] sm:$0xff] }
  0x2c   :  { %v62_v12 = vsub.s32 0, %v61_v11  ;;  %v423_v26 = vmov 11   ;;  %v424_v27 = vmov 12   ;;  %v82_v42 = vld [vmem:[#allocation5 + $0x20] sm:$0xff]  ;;  %v83_v45 = vld [vmem:[#allocation5 + $0x28] sm:$0xff]  ;;  %v93_v47 = vld [vmem:[#allocation5 + $0x30] sm:$0xff] }
  0x2d   :  { %v94_v48 = vld [vmem:[#allocation5 + $0x38] sm:$0xff]  ;;  %v104_v51 = vld [vmem:[#allocation5 + $0x40] sm:$0xff]  ;;  %v105_v52 = vld [vmem:[#allocation5 + $0x48] sm:$0xff]  ;;  %s425_s1 = smov [#allocation7]   ;;  %s426_s17 = smov [#allocation8]  }
  0x2e   :  { %v115_v58 = vld [vmem:[#allocation5 + $0x50] sm:$0xff]  ;;  %v116_v59 = vld [vmem:[#allocation5 + $0x58] sm:$0xff]  ;;  %v127_v1 = vld [vmem:[#allocation5 + $0x68] sm:$0xff]  ;;  %s241_s16 = sshll.u32 %s425_s1, 4  ;;  %s253_s18 = sshll.u32 %s426_s17, 4  ;;  %s242_s16 = int_to_ptr.vmem [resolvable:$true] %s241_s16  ;;  %s254_s18 = int_to_ptr.vmem [resolvable:$true] %s253_s18 }
  0x2f   :  { %s356_s19 = scalar_lea.vmem %s242_s16, 256  ;;  %p361_p3 = scmp.lt.s32.totalorder %s242_s16, %s242_s16 }
  0x30   :  { %p357_p2 = scmp.ne.s32.totalorder %s242_s16, %s356_s19  ;;  %p362_p4 = scmp.lt.s32.totalorder %s356_s19, %s356_s19 }
  0x32   :  { %p363_p5 = por %p362_p4, %p361_p3 }
  0x34   :  { %p364_p6 = pnand %p363_p5, %p357_p2 }
  0xb7   :  { %v48_v2 = vpop.xlane.xlu0 %47 }
  0xb8   :  { %v49_v3 = vsub.f32 %v44_v0, %v48_v2  ;;  %v126_v0 = vld [vmem:[#allocation5 + $0x60] sm:$0xff] }
  0xba   :  { %v50_v4 = vmul.f32 1.442695, %v49_v3 }
  0xbc   :  { %308 = vpow2.f32 %v50_v4 }
  0xc6   :  { %v309_v5 = vpop.eup %308 }
  0xc7   :  { %v52_v6 = vsel %vm45_vm0, %v309_v5, 0.0 }
  0xc8   :  { %53 = vadd.xlane.f32.xlu0 %v52_v6 }
 0x155   :  { %v54_v9 = vpop.xlane.xlu0 %53 }
 0x156   :  { %310 = vrcp.f32 %v54_v9 }
 0x160   :  { %v311_v13 = vpop.eup %310 }
 0x161   :  { %v56_v14 = vmul.f32 %v311_v13, %v309_v5  ;;  %v148_v13 = vld [vmem:[#allocation5 + $0x80] sm:$0xff] }
 0x163   :  { %v63_v15 = vrot.slane %v56_v14, %v62_v12  ;;  %v149_v14 = vld [vmem:[#allocation5 + $0x88] sm:$0xff] }
 0x165   :  { %85 = vperm.xlu0 %292, %v63_v15   ;;  %65 = vperm.xlu1 %290, %v63_v15  }
 0x169   :  { %291 = vset.pattern.permute.xlu1 %v414_v16  ;;  %304 = vset.pattern.permute.xlu0 %v414_v16 }
 0x16a   :  { %74 = vperm.xlu1 %291, %v63_v15   ;;  %223 = vperm.xlu0 %304, %v270_v17  }
 0x16e   :  { %293 = vset.pattern.permute.xlu1 %v413_v8  ;;  %307 = vset.pattern.permute.xlu0 %v415_v18  ;;  %v138_v8 = vld [vmem:[#allocation5 + $0x78] sm:$0xff] }
 0x16f   :  { %209 = vperm.xlu1 %293, %v270_v17  }
 0x173   :  { %294 = vset.pattern.permute.xlu1 %v415_v18 }
 0x174   :  { %96 = vperm.xlu1 %294, %v63_v15  }
 0x178   :  { %295 = vset.pattern.permute.xlu1 %v416_v19  ;;  %v159_v19 = vld [vmem:[#allocation5 + $0x90] sm:$0xff] }
 0x179   :  { %107 = vperm.xlu1 %295, %v63_v15  }
 0x17d   :  { %296 = vset.pattern.permute.xlu1 %v417_v20  ;;  %v160_v20 = vld [vmem:[#allocation5 + $0x98] sm:$0xff] }
 0x17e   :  { %118 = vperm.xlu1 %296, %v63_v15  }
 0x182   :  { %297 = vset.pattern.permute.xlu1 %v418_v21 }
 0x183   :  { %129 = vperm.xlu1 %297, %v63_v15  }
 0x187   :  { %298 = vset.pattern.permute.xlu1 %v419_v22 }
 0x188   :  { %140 = vperm.xlu1 %298, %v63_v15  }
 0x18c   :  { %299 = vset.pattern.permute.xlu1 %v420_v23 }
 0x18d   :  { %151 = vperm.xlu1 %299, %v63_v15  }
 0x191   :  { %300 = vset.pattern.permute.xlu1 %v421_v24 }
 0x192   :  { %162 = vperm.xlu1 %300, %v63_v15  }
 0x196   :  { %301 = vset.pattern.permute.xlu1 %v422_v25 }
 0x197   :  { %173 = vperm.xlu1 %301, %v63_v15  }
 0x19b   :  { %302 = vset.pattern.permute.xlu1 %v423_v26  ;;  %v170_v26 = vld [vmem:[#allocation5 + $0xa0] sm:$0xff] }
 0x19c   :  { %184 = vperm.xlu1 %302, %v63_v15  }
 0x1a0   :  { %303 = vset.pattern.permute.xlu1 %v424_v27  ;;  %v171_v27 = vld [vmem:[#allocation5 + $0xa8] sm:$0xff] }
 0x1a1   :  { %195 = vperm.xlu1 %303, %v63_v15  }
 0x1a5   :  { %305 = vset.pattern.permute.xlu1 %v412_v7  ;;  %v137_v7 = vld [vmem:[#allocation5 + $0x70] sm:$0xff] }
 0x1a6   :  { %215 = vperm.xlu1 %305, %v270_v17  }
 0x1aa   :  { %306 = vset.pattern.permute.xlu1 %v415_v18 }
 0x1ab   :  { %229 = vperm.xlu1 %306, %v270_v17  }
 0x1e4   :  { %v66_v28 = vpop.permute.xlu1 %65  ;;  %v86_v46 = vpop.permute.xlu0 %85 }
 0x1e5   :  { %v68_v43 = vmul.f32 %v66_v28, %v57_v37  ;;  %v69_v44 = vmul.f32 %v66_v28, %v58_v38  ;;  %v88_v54 = vmul.f32 %v86_v46, %v82_v42  ;;  %v89_v55 = vmul.f32 %v86_v46, %v83_v45  ;;  %v193_v45 = vld [vmem:[#allocation5 + $0xc8] sm:$0xff] }
 0x1e9   :  { %v75_v29 = vpop.permute.xlu1 %74 }
 0x1ea   :  { %v77_v39 = vmul.f32 %v75_v29, %v71_v35  ;;  %v78_v40 = vmul.f32 %v75_v29, %v72_v36 }
 0x1ec   :  { %v79_v49 = vadd.f32 %v77_v39, %v68_v43  ;;  %v80_v50 = vadd.f32 %v78_v40, %v69_v44  ;;  %v192_v44 = vld [vmem:[#allocation5 + $0xc0] sm:$0xff] }
 0x1ee   :  { %v489_v30 = vpop.permute.xlu1 %209  ;;  %v90_v60 = vadd.f32 %v88_v54, %v79_v49  ;;  %v91_v61 = vadd.f32 %v89_v55, %v80_v50 }
 0x1f3   :  { %v97_v31 = vpop.permute.xlu1 %96 }
 0x1f4   :  { %v99_v56 = vmul.f32 %v97_v31, %v93_v47  ;;  %v100_v57 = vmul.f32 %v97_v31, %v94_v48 }
 0x1f6   :  { %v101_v2 = vadd.f32 %v99_v56, %v90_v60  ;;  %v102_v3 = vadd.f32 %v100_v57, %v91_v61 }
 0x1f8   :  { %v108_v32 = vpop.permute.xlu1 %107 }
 0x1f9   :  { %v110_v62 = vmul.f32 %v108_v32, %v104_v51  ;;  %v111_v63 = vmul.f32 %v108_v32, %v105_v52 }
 0x1fb   :  { %v112_v9 = vadd.f32 %v110_v62, %v101_v2  ;;  %v113_v10 = vadd.f32 %v111_v63, %v102_v3 }
 0x1fd   :  { %v119_v33 = vpop.permute.xlu1 %118 }
 0x1fe   :  { %v121_v4 = vmul.f32 %v119_v33, %v115_v58  ;;  %v122_v5 = vmul.f32 %v119_v33, %v116_v59  ;;  %v181_v33 = vld [vmem:[#allocation5 + $0xb0] sm:$0xff]  ;;  %v224_v58 = vpop.permute.xlu0 %223 }
 0x200   :  { %v123_v15 = vadd.f32 %v121_v4, %v112_v9  ;;  %v124_v16 = vadd.f32 %v122_v5, %v113_v10 }
 0x202   :  { %v130_v34 = vpop.permute.xlu1 %129 }
 0x203   :  { %v132_v11 = vmul.f32 %v130_v34, %v126_v0  ;;  %v133_v12 = vmul.f32 %v130_v34, %v127_v1  ;;  %v182_v34 = vld [vmem:[#allocation5 + $0xb8] sm:$0xff] }
 0x205   :  { %v134_v22 = vadd.f32 %v132_v11, %v123_v15  ;;  %v135_v23 = vadd.f32 %v133_v12, %v124_v16 }
 0x207   :  { %v141_v41 = vpop.permute.xlu1 %140 }
 0x208   :  { %v143_v17 = vmul.f32 %v141_v41, %v137_v7  ;;  %v144_v18 = vmul.f32 %v141_v41, %v138_v8 }
 0x20a   :  { %v145_v28 = vadd.f32 %v143_v17, %v134_v22  ;;  %v146_v29 = vadd.f32 %v144_v18, %v135_v23 }
 0x20c   :  { %v152_v53 = vpop.permute.xlu1 %151 }
 0x20d   :  { %v154_v24 = vmul.f32 %v152_v53, %v148_v13  ;;  %v155_v25 = vmul.f32 %v152_v53, %v149_v14 }
 0x20f   :  { %v156_v35 = vadd.f32 %v154_v24, %v145_v28  ;;  %v157_v36 = vadd.f32 %v155_v25, %v146_v29 }
 0x211   :  { %v163_v6 = vpop.permute.xlu1 %162 }
 0x212   :  { %v165_v31 = vmul.f32 %v163_v6, %v159_v19  ;;  %v166_v32 = vmul.f32 %v163_v6, %v160_v20 }
 0x214   :  { %v167_v40 = vadd.f32 %v165_v31, %v156_v35  ;;  %v168_v41 = vadd.f32 %v166_v32, %v157_v36 }
 0x216   :  { %v174_v21 = vpop.permute.xlu1 %173 }
 0x217   :  { %v176_v37 = vmul.f32 %v174_v21, %v170_v26  ;;  %v177_v38 = vmul.f32 %v174_v21, %v171_v27 }
 0x219   :  { %v178_v46 = vadd.f32 %v176_v37, %v167_v40  ;;  %v179_v47 = vadd.f32 %v177_v38, %v168_v41 }
 0x21b   :  { %v185_v39 = vpop.permute.xlu1 %184 }
 0x21c   :  { %v187_v42 = vmul.f32 %v185_v39, %v181_v33  ;;  %v188_v43 = vmul.f32 %v185_v39, %v182_v34 }
 0x21e   :  { %v189_v49 = vadd.f32 %v187_v42, %v178_v46  ;;  %v190_v50 = vadd.f32 %v188_v43, %v179_v47 }
 0x220   :  { %v196_v48 = vpop.permute.xlu1 %195 }
 0x221   :  { %v198_v51 = vmul.f32 %v196_v48, %v192_v44  ;;  %v199_v52 = vmul.f32 %v196_v48, %v193_v45 }
 0x223   :  { %v200_v53 = vadd.f32 %v198_v51, %v189_v49  ;;  %v201_v54 = vadd.f32 %v199_v52, %v190_v50 }
 0x225   :  { %v212_v55 = vmul.f32 %v489_v30, %v200_v53  ;;  %v213_v56 = vmul.f32 %v489_v30, %v201_v54  ;;  %v216_v57 = vpop.permute.xlu1 %215  ;;  %v226_v61 = vmul.f32 %v224_v58, %v200_v53  ;;  %v227_v62 = vmul.f32 %v224_v58, %v201_v54 }
 0x227   :  { %v218_v59 = vadd.f32 %v216_v57, %v212_v55  ;;  %v219_v60 = vadd.f32 %v216_v57, %v213_v56 }
 0x229   :  { %220 = vst [vmem:[#allocation7] sm:$0xff] %v218_v59  ;;  %221 = vst [vmem:[#allocation7 + $0x8] sm:$0xff] %v219_v60 }
 0x22a   :  { %v230_v63 = vpop.permute.xlu1 %229 }
 0x22b   :  { %367 = shalt.err (!%p364_p6)
}
 0x22c   :  { %s368_s22 = scalar_lea.hbm %s526_s3, 256 }
 0x22d   :  { %p369_p7 = scmp.ne.s32.totalorder %s526_s3, %s368_s22  ;;  %p372_p8 = scmp.lt.u32.totalorder %s368_s22, %s526_s3 }
 0x22f   :  { %p374_p9 = pnand %p372_p8, %p369_p7 }
 0x231   :  { %377 = shalt.err (!%p374_p9)
}
 0x232   :  { %247 = dma.vmem_to_hbm [thread:$0]  %s242_s16, 256, %s526_s3, [#allocation4], %s410_s0, %s410_s0, %s411_s12   ;;  %v232_v30 = vadd.f32 %v230_v63, %v226_v61  ;;  %v233_v0 = vadd.f32 %v230_v63, %v227_v62 }
 0x233   :  { %s378_s29 = scalar_lea.vmem %s254_s18, 256  ;;  %p383_p11 = scmp.lt.s32.totalorder %s254_s18, %s254_s18 }
 0x234   :  { %234 = vst [vmem:[#allocation8] sm:$0xff] %v232_v30  ;;  %235 = vst [vmem:[#allocation8 + $0x8] sm:$0xff] %v233_v0  ;;  %p379_p10 = scmp.ne.s32.totalorder %s254_s18, %s378_s29  ;;  %p384_p12 = scmp.lt.s32.totalorder %s378_s29, %s378_s29 }
 0x236   :  { %p385_p13 = por %p384_p12, %p383_p11 }
 0x238   :  { %p386_p0 = pnand %p385_p13, %p379_p10 }
 0x23a   :  { %389 = shalt.err (!%p386_p0)
}
 0x23b   :  { %s390_s6 = scalar_lea.hbm %s527_s4, 256 }
 0x23c   :  { %p391_p1 = scmp.ne.s32.totalorder %s527_s4, %s390_s6  ;;  %p394_p2 = scmp.lt.u32.totalorder %s390_s6, %s527_s4 }
 0x23e   :  { %p396_p3 = pnand %p394_p2, %p391_p1 }
 0x240   :  { %399 = shalt.err (!%p396_p3)
}
 0x241   :  { %259 = dma.vmem_to_hbm [thread:$0]  %s254_s18, 256, %s527_s4, [#allocation9], %s410_s0, %s410_s0, %s411_s12  }
 0x242   :  { %404 = dma.done.wait [#allocation4], 256  }
 0x243   :  { %405 = vsyncadd [#allocation4], 4294967040 }
 0x244   :  { %406 = dma.done.wait [#allocation9], 256  }
 0x245   :  { %407 = vsyncadd [#allocation9], 4294967040 }
 0x246   :  { %266 = vsyncpa [#allocation3], 1 }
 0x247   :  { %267 = vsyncpa [#allocation6], 1 }
 0x248   :  { %268 = vsyncpa [#allocation4], 1 }
 0x249   :  { %269 = vsyncpa [#allocation9], 1 }

</bundles_post_ra>
